<compile_context>
chip_gen: v6e
topology: v6e:2x2x1
jax: 0.10.0
libtpu: 0.0.40
codegen_flags: <defaults>
</compile_context>

<pallas_src>
import jax
import jax.numpy as jnp
from jax.experimental import pallas as pl
from jax.experimental.pallas import tpu as pltpu


def _round_up(x, m):
    return (x + m - 1) // m * m


def mlp_kernel(ctx_ref, w1e_ref, b1_ref, w2_ref, b2_ref, o_ref):
    # ctx_ref: (TM, K)          int32  context token ids, slot order [oldest .. current]
    # w1e_ref: (K, Vpad, Hpad)  bf16   per-slot (emb_table @ W1_slot), zero padded
    # b1_ref : (1, Hpad)        f32
    # w2_ref : (Hpad, Vpad)     bf16
    # b2_ref : (1, Vpad)        f32
    # o_ref  : (TM, Vpad)       f32
    tm = o_ref.shape[0]
    n_ctx, vpad, hpad = w1e_ref.shape

    lane = jax.lax.broadcasted_iota(jnp.int32, (tm, vpad), 1)
    ids = ctx_ref[...]                                                 # (TM, K) int32
    acc = jnp.zeros((tm, hpad), dtype=jnp.float32)
    for k in range(n_ctx):  # static unroll, block_size is tiny (3)
        one_hot = jnp.where(lane == ids[:, k:k + 1], 1.0, 0.0).astype(jnp.bfloat16)
        # one_hot @ (emb_table @ W1_slot)  ==  emb_table[ids_k] @ W1_slot  (exact select)
        acc += jnp.dot(one_hot, w1e_ref[k], preferred_element_type=jnp.float32)

    h = jnp.tanh(acc + b1_ref[...])                                    # f32, EUP tanh
    logits = jnp.dot(h.astype(jnp.bfloat16), w2_ref[...],
                     preferred_element_type=jnp.float32) + b2_ref[...]
    o_ref[...] = logits.astype(o_ref.dtype)


def mlp_forward_pallas(ctx_ids, emb_table, w1, b1, w2, b2):
    """ctx_ids: (N, K) int32 context ids.  Returns (N, V) f32 logits."""
    N, K = ctx_ids.shape
    V, E = emb_table.shape
    H = w1.shape[1]
    assert w1.shape[0] == K * E and w2.shape == (H, V)

    LANE = 128
    Vpad = _round_up(V, LANE)
    Hpad = _round_up(H, LANE)

    # Fold the embedding table into the first linear layer, one (V, H) slab per context
    # slot:  emb_x @ W1 == sum_k one_hot(id_k, V) @ (emb_table @ W1[kE:(k+1)E]).
    w1e = jnp.einsum("ve,keh->kvh", emb_table.astype(jnp.float32),
                     w1.astype(jnp.float32).reshape(K, E, H))          # (K, V, H) f32
    w1e = jnp.pad(w1e, ((0, 0), (0, Vpad - V), (0, Hpad - H))).astype(jnp.bfloat16)
    b1p = jnp.pad(b1.astype(jnp.float32).reshape(1, H), ((0, 0), (0, Hpad - H)))
    w2p = jnp.pad(w2.astype(jnp.float32),
                  ((0, Hpad - H), (0, Vpad - V))).astype(jnp.bfloat16)
    b2p = jnp.pad(b2.astype(jnp.float32).reshape(1, V), ((0, 0), (0, Vpad - V)))

    # Row tiling: one grid step per TM rows; weights stay VMEM-resident (constant
    # index_map).  TM <= 512 keeps double-buffered tiles well under VMEM on all gens.
    TM = min(512, _round_up(N, 8))
    Npad = _round_up(N, TM)
    ctx_p = jnp.pad(ctx_ids.astype(jnp.int32), ((0, Npad - N), (0, 0)))

    flops = 2 * Npad * (K * Vpad * Hpad + Hpad * Vpad)
    bytes_accessed = (ctx_p.size * 4 + w1e.size * 2 + w2p.size * 2
                      + b1p.size * 4 + b2p.size * 4 + Npad * Vpad * 4)

    out = pl.pallas_call(
        mlp_kernel,
        out_shape=jax.ShapeDtypeStruct((Npad, Vpad), jnp.float32),
        grid_spec=pltpu.PrefetchScalarGridSpec(
            num_scalar_prefetch=0,
            grid=(Npad // TM,),
            in_specs=[
                pl.BlockSpec((TM, K), lambda i: (i, 0)),             # ids: row-tiled
                pl.BlockSpec((K, Vpad, Hpad), lambda i: (0, 0, 0)),  # resident weights
                pl.BlockSpec((1, Hpad), lambda i: (0, 0)),
                pl.BlockSpec((Hpad, Vpad), lambda i: (0, 0)),
                pl.BlockSpec((1, Vpad), lambda i: (0, 0)),
            ],
            out_specs=pl.BlockSpec((TM, Vpad), lambda i: (i, 0)),
        ),
        compiler_params=pltpu.CompilerParams(
            dimension_semantics=("parallel",)),
        cost_estimate=pl.CostEstimate(
            flops=flops, transcendentals=Npad * Hpad,
            bytes_accessed=bytes_accessed),
    )(ctx_p, w1e, b1p, w2p, b2p)

    return out[:N, :V]


def build_context_ids(tokens, block_size):
    """Replicates the torch roll/zero/concat loop at the id level.

    Returns (B, T, block_size) int32 with slot order [oldest .. current], matching
    torch.cat(embs[::-1], -1) column order.
    """
    shifted = []
    x = tokens
    for _ in range(block_size):
        shifted.append(x)
        x = jnp.roll(x, 1, axis=1)
        x = x.at[:, 0].set(0)
    shifted.reverse()
    return jnp.stack(shifted, axis=-1).astype(jnp.int32)


def mlp_model(tokens, emb_table, w1, b1, w2, b2, block_size):
    B, T = tokens.shape
    ctx = build_context_ids(tokens, block_size).reshape(B * T, block_size)
    logits = mlp_forward_pallas(ctx, emb_table, w1, b1, w2, b2)
    return logits.reshape(B, T, w2.shape[1])


if __name__ == "__main__":
    vocab_size = 27
    block_size = 3
    emb_dim = 16
    hidden_dim = 64
    B, T = 2, 8

    key = jax.random.PRNGKey(0)
    k_emb, k_w1, k_b1, k_w2, k_b2, k_x = jax.random.split(key, 6)

    # Deterministic synthetic parameters (shapes per nn.Embedding / nn.Linear forward math).
    emb_table = jax.random.normal(k_emb, (vocab_size, emb_dim), jnp.float32) * 0.1
    D = emb_dim * block_size
    w1 = jax.random.normal(k_w1, (D, hidden_dim), jnp.float32) * (1.0 / D ** 0.5)
    b1 = jax.random.normal(k_b1, (hidden_dim,), jnp.float32) * 0.01
    w2 = jax.random.normal(k_w2, (hidden_dim, vocab_size), jnp.float32) * (1.0 / hidden_dim ** 0.5)
    b2 = jax.random.normal(k_b2, (vocab_size,), jnp.float32) * 0.01

    tokens = jax.random.randint(k_x, (B, T), 0, vocab_size, jnp.int32)

    logits = mlp_model(tokens, emb_table, w1, b1, w2, b2, block_size)
    logits = jax.block_until_ready(logits)
    assert logits.shape == (B, T, vocab_size)

    # Pure-JAX f32 reference of the full forward pass.  Kernel uses bf16 matmul
    # operands (f32 accumulation), so allow ~1e-2 slack on ~0.1-magnitude logits.
    ctx = build_context_ids(tokens, block_size)                  # (B, T, K)
    emb_x = emb_table[ctx].reshape(B, T, block_size * emb_dim)
    ref = jnp.tanh(emb_x @ w1 + b1) @ w2 + b2
    assert jnp.allclose(logits, ref, atol=1e-2, rtol=1e-2), (
        float(jnp.max(jnp.abs(logits - ref))))

    print("KERNEL_OK")
</pallas_src>

<mosaic_0001>
module attributes {stable_mosaic.version = 11 : i64} {
  func.func @mlp_kernel(%arg0: i32, %arg1: memref<16x3xi32, #tpu.memory_space<vmem>>, %arg2: memref<3x128x128xbf16, #tpu.memory_space<vmem>>, %arg3: memref<1x128xf32, #tpu.memory_space<vmem>>, %arg4: memref<128x128xbf16, #tpu.memory_space<vmem>>, %arg5: memref<1x128xf32, #tpu.memory_space<vmem>>, %arg6: memref<16x128xf32, #tpu.memory_space<vmem>>) attributes {dimension_semantics = [#tpu.dimension_semantics<parallel>], iteration_bounds = array<i64: 1>, scalar_prefetch = 0 : i64, scratch_operands = 0 : i64, tpu.core_type = #tpu.core_type<tc>, window_params = [{transform_indices = @transform_0, window_bounds = array<i64: 16, 3>}, {pipeline_mode = #tpu.pipeline_mode<synchronous>, transform_indices = @transform_1, window_bounds = array<i64: 3, 128, 128>}, {pipeline_mode = #tpu.pipeline_mode<synchronous>, transform_indices = @transform_2, window_bounds = array<i64: 1, 128>}, {pipeline_mode = #tpu.pipeline_mode<synchronous>, transform_indices = @transform_3, window_bounds = array<i64: 128, 128>}, {pipeline_mode = #tpu.pipeline_mode<synchronous>, transform_indices = @transform_4, window_bounds = array<i64: 1, 128>}, {transform_indices = @transform_5, window_bounds = array<i64: 16, 128>}]} {
    %0 = tpu.iota {dimensions = array<i32: 1>} : vector<16x128xi32>
    %c0 = arith.constant 0 : index
    %c0_0 = arith.constant 0 : index
    %1 = vector.load %arg1[%c0, %c0_0] : memref<16x3xi32, #tpu.memory_space<vmem>>, vector<16x3xi32>
    %cst = arith.constant 0.000000e+00 : f32
    %2 = vector.broadcast %cst : f32 to vector<16x128xf32>
    %3 = vector.extract_strided_slice %1 {offsets = [0, 0], sizes = [16, 1], strides = [1, 1]} : vector<16x3xi32> to vector<16x1xi32>
    %4 = vector.broadcast %3 : vector<16x1xi32> to vector<16x128xi32>
    %5 = arith.cmpi eq, %0, %4 : vector<16x128xi32>
    %cst_1 = arith.constant 1.000000e+00 : f32
    %cst_2 = arith.constant 0.000000e+00 : f32
    %6 = vector.broadcast %cst_1 : f32 to vector<16x128xf32>
    %7 = vector.broadcast %cst_2 : f32 to vector<16x128xf32>
    %8 = arith.select %5, %6, %7 : vector<16x128xi1>, vector<16x128xf32>
    %9 = arith.truncf %8 : vector<16x128xf32> to vector<16x128xbf16>
    %c0_3 = arith.constant 0 : index
    %c0_4 = arith.constant 0 : index
    %c0_5 = arith.constant 0 : index
    %10 = vector.load %arg2[%c0_3, %c0_4, %c0_5] : memref<3x128x128xbf16, #tpu.memory_space<vmem>>, vector<1x128x128xbf16>
    %11 = vector.shape_cast %10 : vector<1x128x128xbf16> to vector<128x128xbf16>
    %cst_6 = arith.constant dense<0.000000e+00> : vector<16x128xf32>
    %12 = tpu.matmul %9, %11, %cst_6 {dimension_numbers = #tpu.dot_dimension_numbers<[1], [0], [0], [1], [0, 0, 1, 1], [], []>} : vector<16x128xbf16>, vector<128x128xbf16>, vector<16x128xf32> -> vector<16x128xf32>
    %13 = arith.addf %2, %12 : vector<16x128xf32>
    %14 = vector.extract_strided_slice %1 {offsets = [0, 1], sizes = [16, 1], strides = [1, 1]} : vector<16x3xi32> to vector<16x1xi32>
    %15 = vector.broadcast %14 : vector<16x1xi32> to vector<16x128xi32>
    %16 = arith.cmpi eq, %0, %15 : vector<16x128xi32>
    %cst_7 = arith.constant 1.000000e+00 : f32
    %cst_8 = arith.constant 0.000000e+00 : f32
    %17 = vector.broadcast %cst_7 : f32 to vector<16x128xf32>
    %18 = vector.broadcast %cst_8 : f32 to vector<16x128xf32>
    %19 = arith.select %16, %17, %18 : vector<16x128xi1>, vector<16x128xf32>
    %20 = arith.truncf %19 : vector<16x128xf32> to vector<16x128xbf16>
    %c1 = arith.constant 1 : index
    %c0_9 = arith.constant 0 : index
    %c0_10 = arith.constant 0 : index
    %21 = vector.load %arg2[%c1, %c0_9, %c0_10] : memref<3x128x128xbf16, #tpu.memory_space<vmem>>, vector<1x128x128xbf16>
    %22 = vector.shape_cast %21 : vector<1x128x128xbf16> to vector<128x128xbf16>
    %cst_11 = arith.constant dense<0.000000e+00> : vector<16x128xf32>
    %23 = tpu.matmul %20, %22, %cst_11 {dimension_numbers = #tpu.dot_dimension_numbers<[1], [0], [0], [1], [0, 0, 1, 1], [], []>} : vector<16x128xbf16>, vector<128x128xbf16>, vector<16x128xf32> -> vector<16x128xf32>
    %24 = arith.addf %13, %23 : vector<16x128xf32>
    %25 = vector.extract_strided_slice %1 {offsets = [0, 2], sizes = [16, 1], strides = [1, 1]} : vector<16x3xi32> to vector<16x1xi32>
    %26 = vector.broadcast %25 : vector<16x1xi32> to vector<16x128xi32>
    %27 = arith.cmpi eq, %0, %26 : vector<16x128xi32>
    %cst_12 = arith.constant 1.000000e+00 : f32
    %cst_13 = arith.constant 0.000000e+00 : f32
    %28 = vector.broadcast %cst_12 : f32 to vector<16x128xf32>
    %29 = vector.broadcast %cst_13 : f32 to vector<16x128xf32>
    %30 = arith.select %27, %28, %29 : vector<16x128xi1>, vector<16x128xf32>
    %31 = arith.truncf %30 : vector<16x128xf32> to vector<16x128xbf16>
    %c2 = arith.constant 2 : index
    %c0_14 = arith.constant 0 : index
    %c0_15 = arith.constant 0 : index
    %32 = vector.load %arg2[%c2, %c0_14, %c0_15] : memref<3x128x128xbf16, #tpu.memory_space<vmem>>, vector<1x128x128xbf16>
    %33 = vector.shape_cast %32 : vector<1x128x128xbf16> to vector<128x128xbf16>
    %cst_16 = arith.constant dense<0.000000e+00> : vector<16x128xf32>
    %34 = tpu.matmul %31, %33, %cst_16 {dimension_numbers = #tpu.dot_dimension_numbers<[1], [0], [0], [1], [0, 0, 1, 1], [], []>} : vector<16x128xbf16>, vector<128x128xbf16>, vector<16x128xf32> -> vector<16x128xf32>
    %35 = arith.addf %24, %34 : vector<16x128xf32>
    %c0_17 = arith.constant 0 : index
    %c0_18 = arith.constant 0 : index
    %36 = vector.load %arg3[%c0_17, %c0_18] : memref<1x128xf32, #tpu.memory_space<vmem>>, vector<1x128xf32>
    %37 = vector.broadcast %36 : vector<1x128xf32> to vector<16x128xf32>
    %38 = arith.addf %35, %37 : vector<16x128xf32>
    %39 = math.tanh %38 : vector<16x128xf32>
    %40 = arith.truncf %39 : vector<16x128xf32> to vector<16x128xbf16>
    %c0_19 = arith.constant 0 : index
    %c0_20 = arith.constant 0 : index
    %41 = vector.load %arg4[%c0_19, %c0_20] : memref<128x128xbf16, #tpu.memory_space<vmem>>, vector<128x128xbf16>
    %cst_21 = arith.constant dense<0.000000e+00> : vector<16x128xf32>
    %42 = tpu.matmul %40, %41, %cst_21 {dimension_numbers = #tpu.dot_dimension_numbers<[1], [0], [0], [1], [0, 0, 1, 1], [], []>} : vector<16x128xbf16>, vector<128x128xbf16>, vector<16x128xf32> -> vector<16x128xf32>
    %c0_22 = arith.constant 0 : index
    %c0_23 = arith.constant 0 : index
    %43 = vector.load %arg5[%c0_22, %c0_23] : memref<1x128xf32, #tpu.memory_space<vmem>>, vector<1x128xf32>
    %44 = vector.broadcast %43 : vector<1x128xf32> to vector<16x128xf32>
    %45 = arith.addf %42, %44 : vector<16x128xf32>
    %c0_24 = arith.constant 0 : index
    %c0_25 = arith.constant 0 : index
    %46 = vector.load %arg6[%c0_24, %c0_25] : memref<16x128xf32, #tpu.memory_space<vmem>>, vector<16x128xf32>
    tpu.vector_store %arg6[%c0_24, %c0_25], %45 {strides = array<i32>} : memref<16x128xf32, #tpu.memory_space<vmem>>, vector<16x128xf32>,
    return
  }
  func.func @transform_0(%arg0: i32) -> (i32, i32) {
    %c0_i32 = arith.constant 0 : i32
    %c0_i32_0 = arith.constant 0 : i32
    return %arg0, %c0_i32 : i32, i32
  }
  func.func @transform_1(%arg0: i32) -> (i32, i32, i32) {
    %c0_i32 = arith.constant 0 : i32
    %c0_i32_0 = arith.constant 0 : i32
    %c0_i32_1 = arith.constant 0 : i32
    %c0_i32_2 = arith.constant 0 : i32
    return %c0_i32, %c0_i32_0, %c0_i32_1 : i32, i32, i32
  }
  func.func @transform_2(%arg0: i32) -> (i32, i32) {
    %c0_i32 = arith.constant 0 : i32
    %c0_i32_0 = arith.constant 0 : i32
    %c0_i32_1 = arith.constant 0 : i32
    return %c0_i32, %c0_i32_0 : i32, i32
  }
  func.func @transform_3(%arg0: i32) -> (i32, i32) {
    %c0_i32 = arith.constant 0 : i32
    %c0_i32_0 = arith.constant 0 : i32
    %c0_i32_1 = arith.constant 0 : i32
    return %c0_i32, %c0_i32_0 : i32, i32
  }
  func.func @transform_4(%arg0: i32) -> (i32, i32) {
    %c0_i32 = arith.constant 0 : i32
    %c0_i32_0 = arith.constant 0 : i32
    %c0_i32_1 = arith.constant 0 : i32
    return %c0_i32, %c0_i32_0 : i32, i32
  }
  func.func @transform_5(%arg0: i32) -> (i32, i32) {
    %c0_i32 = arith.constant 0 : i32
    %c0_i32_0 = arith.constant 0 : i32
    return %arg0, %c0_i32 : i32, i32
  }
}

</mosaic_0001>

<bundles_post_ra>
// kernel: tpu_custom_call.1
= control target key start
LH: loop header
LB: loop body
LE: loop exit
PB: predicated region body
PF: predicated region fallthrough
CT: control target
= control target key end

     0   :  { %10 = vsyncpa [#allocation3], 0  ;;  %s929_s0 = inlined_call_operand.vmem [shape: s32[16,3], index: 0, kind: input, shape index: {}]   ;;  %s930_s1 = inlined_call_operand.hbm [shape: bf16[3,128,128], index: 1, kind: input, shape index: {}]   ;;  %s931_s2 = inlined_call_operand.vmem [shape: f32[1,128], index: 2, kind: input, shape index: {}]   ;;  %s932_s3 = inlined_call_operand.hbm [shape: bf16[128,128], index: 3, kind: input, shape index: {}]   ;;  %s933_s4 = inlined_call_operand.vmem [shape: f32[1,128], index: 4, kind: input, shape index: {}]   ;;  %s934_s5 = inlined_call_operand.hbm [shape: f32[16,128], index: 5, kind: output, shape index: {}]  }
   0x1   :  { %11 = vsyncpa [#allocation6], 0 }
   0x2   :  { %12 = vsyncpa [#allocation4], 0  ;;  %s825_s18 = smov [#allocation2]  }
   0x3   :  { %s20_s19 = sshll.u32 %s825_s18, 4  ;;  %s21_s19 = int_to_ptr.vmem [resolvable:$true] %s20_s19 }
   0x4   :  { %s767_s20 = scalar_lea.vmem %s21_s19, 3072  ;;  %p772_p1 = scmp.lt.s32.totalorder %s21_s19, %s21_s19 }
   0x5   :  { %p768_p0 = scmp.ne.s32.totalorder %s21_s19, %s767_s20  ;;  %p773_p2 = scmp.lt.s32.totalorder %s767_s20, %s767_s20 }
   0x7   :  { %p774_p3 = por %p773_p2, %p772_p1 }
   0x9   :  { %p775_p4 = pnand %p774_p3, %p768_p0 }
   0xb   :  { %778 = shalt.err (!%p775_p4)
}
   0xc   :  { %s826_s21 = smov 64   ;;  %s827_s22 = smov 4  }
   0xd   :  { %26 = dma.hbm_to_vmem [thread:$0]  %s930_s1, 3072, %s21_s19, [#allocation3], %s826_s21, %s826_s21, %s827_s22  }
   0xe   :  { %s828_s25 = smov [#allocation5]  }
   0xf   :  { %s34_s26 = sshll.u32 %s828_s25, 4  ;;  %s35_s26 = int_to_ptr.vmem [resolvable:$true] %s34_s26 }
  0x10   :  { %s787_s27 = scalar_lea.vmem %s35_s26, 1024  ;;  %p792_p6 = scmp.lt.s32.totalorder %s35_s26, %s35_s26 }
  0x11   :  { %p788_p5 = scmp.ne.s32.totalorder %s35_s26, %s787_s27  ;;  %p793_p7 = scmp.lt.s32.totalorder %s787_s27, %s787_s27 }
  0x13   :  { %p794_p8 = por %p793_p7, %p792_p6 }
  0x15   :  { %p795_p9 = pnand %p794_p8, %p788_p5 }
  0x17   :  { %798 = shalt.err (!%p795_p9)
}
  0x18   :  { %40 = dma.hbm_to_vmem [thread:$0]  %s932_s3, 1024, %s35_s26, [#allocation6], %s826_s21, %s826_s21, %s827_s22  }
  0x19   :  { %819 = dma.done.wait [#allocation3], 3072  }
  0x1a   :  { %820 = vsyncadd [#allocation3], 4294964224 }
  0x1b   :  { %821 = dma.done.wait [#allocation6], 1024  }
  0x1c   :  { %822 = vsyncadd [#allocation6], 4294966272  ;;  %v829_v0 = vmov 1   ;;  %v830_v1 = vmov 0   ;;  %v831_v2 = vmov 0.0   ;;  %v52_v3 = vld [vmem:[%s929_s0] sm:$0xff]  ;;  %v50_v22 = vlaneseq }
  0x1d   :  { %719 = vset.pattern.permute.xlu0 %v829_v0  ;;  %720 = vset.pattern.permute.xlu1 %v830_v1  ;;  %v53_v4 = vld [vmem:[%s929_s0 + $0x8] sm:$0xff]  ;;  %v723_v5 = vld [vmem:[#allocation2 + $0x78] sm:$0xff]   ;;  %v725_v7 = vld [vmem:[#allocation2 + $0x70] sm:$0xff]   ;;  %vm832_vm0 = vmmov 0   ;;  %v833_v11 = vmov 2  }
  0x1e   :  { %626 = vmatprep.subr.bf16.mxu0 %v831_v2  ;;  %646 = vmatprep.subr.bf16.mxu1 %v831_v2  ;;  %v724_v6 = vld [vmem:[#allocation2 + $0x38] sm:$0xff]   ;;  %v726_v8 = vld [vmem:[#allocation2 + $0x30] sm:$0xff]   ;;  %v727_v9 = vld [vmem:[#allocation2 + $0x68] sm:$0xff]   ;;  %v51_v25 = vand.u32 127, %v50_v22  ;;  %v834_v29 = vmov 1.0|1.0  }
  0x1f   :  { %55 = vperm.xlu1 %720, %v52_v3   ;;  %82 = vperm.xlu0 %719, %v52_v3   ;;  %v728_v10 = vld [vmem:[#allocation2 + $0x28] sm:$0xff]   ;;  %v729_v12 = vld [vmem:[#allocation2 + $0x60] sm:$0xff]   ;;  %v731_v14 = vld [vmem:[#allocation2 + $0x58] sm:$0xff]  }
  0x20   :  { %627 = vmatpush3.bf16.msra.mxu0 %v723_v5  ;;  %642 = vmatprep.mubr.msk.bf16.mxu0 %vm832_vm0, %v831_v2  ;;  %v730_v13 = vld [vmem:[#allocation2 + $0x20] sm:$0xff]   ;;  %v732_v15 = vld [vmem:[#allocation2 + $0x18] sm:$0xff]   ;;  %v733_v16 = vld [vmem:[#allocation2 + $0x50] sm:$0xff]  }
  0x21   :  { %647 = vmatpush3.bf16.msra.mxu1 %v724_v6  ;;  %628 = vmatprep.subr.bf16.mxu0 %v831_v2  ;;  %v734_v17 = vld [vmem:[#allocation2 + $0x10] sm:$0xff]   ;;  %v735_v18 = vld [vmem:[#allocation2 + $0x48] sm:$0xff]   ;;  %v737_v20 = vld [vmem:[#allocation2 + $0x40] sm:$0xff]  }
  0x22   :  { %648 = vmatprep.subr.bf16.mxu1 %v831_v2  ;;  %662 = vmatprep.mubr.msk.bf16.mxu1 %vm832_vm0, %v831_v2  ;;  %v736_v19 = vld [vmem:[#allocation2 + $0x8] sm:$0xff]   ;;  %v738_v21 = vld [vmem:[#allocation2] sm:$0xff]   ;;  %v739_v28 = vld [vmem:[#allocation2 + $0xb8] sm:$0xff]  }
  0x23   :  { %58 = vperm.xlu1 %720, %v53_v4   ;;  %85 = vperm.xlu0 %719, %v53_v4   ;;  %v740_v30 = vld [vmem:[#allocation2 + $0xb0] sm:$0xff]   ;;  %v741_v31 = vld [vmem:[#allocation2 + $0xa8] sm:$0xff]   ;;  %v742_v32 = vld [vmem:[#allocation2 + $0xa0] sm:$0xff]  }
  0x24   :  { %629 = vmatpush3.bf16.msra.mxu0 %v725_v7  ;;  %v743_v33 = vld [vmem:[#allocation2 + $0x98] sm:$0xff]   ;;  %v744_v34 = vld [vmem:[#allocation2 + $0x90] sm:$0xff]   ;;  %v745_v35 = vld [vmem:[#allocation2 + $0x88] sm:$0xff]  }
  0x25   :  { %649 = vmatpush3.bf16.msra.mxu1 %v726_v8  ;;  %630 = vmatprep.subr.bf16.mxu0 %v831_v2  ;;  %v746_v38 = vld [vmem:[#allocation2 + $0x80] sm:$0xff]   ;;  %v747_v39 = vld [vmem:[#allocation5 + $0x38] sm:$0xff]   ;;  %v748_v40 = vld [vmem:[#allocation5 + $0x30] sm:$0xff]  }
  0x26   :  { %650 = vmatprep.subr.bf16.mxu1 %v831_v2  ;;  %v749_v41 = vld [vmem:[#allocation5 + $0x28] sm:$0xff]   ;;  %v750_v42 = vld [vmem:[#allocation5 + $0x20] sm:$0xff]   ;;  %v751_v43 = vld [vmem:[#allocation5 + $0x18] sm:$0xff]  }
  0x27   :  { %722 = vset.pattern.permute.xlu1 %v833_v11  ;;  %721 = vset.pattern.permute.xlu0 %v833_v11  ;;  %v752_v44 = vld [vmem:[#allocation5 + $0x10] sm:$0xff]   ;;  %v753_v45 = vld [vmem:[#allocation5 + $0x8] sm:$0xff]   ;;  %v754_v46 = vld [vmem:[#allocation5] sm:$0xff]  }
  0x28   :  { %291 = vperm.xlu1 %722, %v53_v4   ;;  %288 = vperm.xlu0 %721, %v52_v3   ;;  %v580_v58 = vld [vmem:[%s931_s2] ss:$0 sm:$0xff]  ;;  %s835_s2 = smov [#allocation7]  }
  0x29   :  { %631 = vmatpush3.bf16.msra.mxu0 %v727_v9  ;;  %651 = vmatpush3.bf16.msra.mxu1 %v728_v10  ;;  %v581_v5 = vld [vmem:[%s933_s4] ss:$0 sm:$0xff]  ;;  %s537_s10 = sshll.u32 %s835_s2, 4  ;;  %s538_s10 = int_to_ptr.vmem [resolvable:$true] %s537_s10 }
  0x2a   :  { %632 = vmatprep.subr.bf16.mxu0 %v831_v2  ;;  %652 = vmatprep.subr.bf16.mxu1 %v831_v2  ;;  %s799_s11 = scalar_lea.vmem %s538_s10, 256  ;;  %p804_p11 = scmp.lt.s32.totalorder %s538_s10, %s538_s10 }
  0x2b   :  { %p800_p10 = scmp.ne.s32.totalorder %s538_s10, %s799_s11  ;;  %p805_p12 = scmp.lt.s32.totalorder %s799_s11, %s799_s11 }
  0x2d   :  { %633 = vmatpush3.bf16.msra.mxu0 %v729_v12  ;;  %653 = vmatpush3.bf16.msra.mxu1 %v730_v13  ;;  %p806_p13 = por %p805_p12, %p804_p11 }
  0x2e   :  { %634 = vmatprep.subr.bf16.mxu0 %v831_v2  ;;  %654 = vmatprep.subr.bf16.mxu1 %v831_v2 }
  0x2f   :  { %p807_p0 = pnand %p806_p13, %p800_p10 }
  0x31   :  { %635 = vmatpush3.bf16.msra.mxu0 %v731_v14  ;;  %655 = vmatpush3.bf16.msra.mxu1 %v732_v15 }
  0x32   :  { %636 = vmatprep.subr.bf16.mxu0 %v831_v2  ;;  %656 = vmatprep.subr.bf16.mxu1 %v831_v2 }
  0x35   :  { %637 = vmatpush3.bf16.msra.mxu0 %v733_v16  ;;  %657 = vmatpush3.bf16.msra.mxu1 %v734_v17 }
  0x36   :  { %638 = vmatprep.subr.bf16.mxu0 %v831_v2  ;;  %658 = vmatprep.subr.bf16.mxu1 %v831_v2 }
  0x39   :  { %639 = vmatpush3.bf16.msra.mxu0 %v735_v18  ;;  %659 = vmatpush3.bf16.msra.mxu1 %v736_v19 }
  0x3a   :  { %640 = vmatprep.subr.bf16.mxu0 %v831_v2  ;;  %660 = vmatprep.subr.bf16.mxu1 %v831_v2 }
  0x3d   :  { %641 = vmatpush3.bf16.msra.mxu0 %v737_v20  ;;  %661 = vmatpush3.bf16.msra.mxu1 %v738_v21 }
  0x3e   :  { %666 = vmatprep.subr.bf16.mxu0 %v831_v2  ;;  %686 = vmatprep.subr.bf16.mxu1 %v831_v2 }
  0x9a   :  { %v56_v23 = vpop.permute.xlu1 %55  ;;  %v83_v24 = vpop.permute.xlu0 %82 }
  0x9b   :  { %vm60_vm1 = vcmp.eq.s32.totalorder %v51_v25, %v56_v23  ;;  %vm87_vm4 = vcmp.eq.s32.totalorder %v51_v25, %v83_v24 }
  0x9e   :  { %v59_v26 = vpop.permute.xlu1 %58  ;;  %v86_v27 = vpop.permute.xlu0 %85 }
  0x9f   :  { %vm61_vm2 = vcmp.eq.s32.totalorder %v51_v25, %v59_v26  ;;  %vm88_vm3 = vcmp.eq.s32.totalorder %v51_v25, %v86_v27 }
  0xa0   :  { %vm568_vm5 = vmpackc.low %vm61_vm2, %vm60_vm1 }
  0xa1   :  { %vm558_vm6 = vmpackc.low %vm88_vm3, %vm87_vm4  ;;  %663 = vmatmul.mubr.msk.bf16.vlgmr.msra.gmra.mxu1 %vm568_vm5, %v834_v29 }
  0xa2   :  { %643 = vmatmul.mubr.msk.bf16.vlgmr.msra.gmra.mxu0 %vm558_vm6, %v834_v29  ;;  %702 = vmatprep.mubr.msk.bf16.mxu1 %vm832_vm0, %v831_v2 }
  0xa3   :  { %667 = vmatpush3.bf16.msra.mxu0 %v739_v28  ;;  %682 = vmatprep.mubr.msk.bf16.mxu0 %vm832_vm0, %v831_v2  ;;  %v292_v36 = vpop.permute.xlu1 %291  ;;  %v289_v37 = vpop.permute.xlu0 %288 }
  0xa4   :  { %668 = vmatprep.subr.bf16.mxu0 %v831_v2  ;;  %vm294_vm7 = vcmp.eq.s32.totalorder %v51_v25, %v292_v36  ;;  %vm293_vm8 = vcmp.eq.s32.totalorder %v51_v25, %v289_v37  ;;  %687 = vmatpush3.bf16.msra.mxu1 %v747_v39 }
  0xa5   :  { %vm578_vm9 = vmpackc.low %vm294_vm7, %vm293_vm8  ;;  %688 = vmatprep.subr.bf16.mxu1 %v831_v2 }
  0xa7   :  { %669 = vmatpush3.bf16.msra.mxu0 %v740_v30 }
  0xa8   :  { %670 = vmatprep.subr.bf16.mxu0 %v831_v2  ;;  %689 = vmatpush3.bf16.msra.mxu1 %v748_v40 }
  0xa9   :  { %690 = vmatprep.subr.bf16.mxu1 %v831_v2 }
  0xab   :  { %671 = vmatpush3.bf16.msra.mxu0 %v741_v31 }
  0xac   :  { %672 = vmatprep.subr.bf16.mxu0 %v831_v2  ;;  %691 = vmatpush3.bf16.msra.mxu1 %v749_v41 }
  0xad   :  { %692 = vmatprep.subr.bf16.mxu1 %v831_v2 }
  0xaf   :  { %673 = vmatpush3.bf16.msra.mxu0 %v742_v32 }
  0xb0   :  { %674 = vmatprep.subr.bf16.mxu0 %v831_v2  ;;  %693 = vmatpush3.bf16.msra.mxu1 %v750_v42 }
  0xb1   :  { %694 = vmatprep.subr.bf16.mxu1 %v831_v2 }
  0xb3   :  { %675 = vmatpush3.bf16.msra.mxu0 %v743_v33 }
  0xb4   :  { %676 = vmatprep.subr.bf16.mxu0 %v831_v2  ;;  %695 = vmatpush3.bf16.msra.mxu1 %v751_v43 }
  0xb5   :  { %696 = vmatprep.subr.bf16.mxu1 %v831_v2 }
  0xb7   :  { %677 = vmatpush3.bf16.msra.mxu0 %v744_v34 }
  0xb8   :  { %678 = vmatprep.subr.bf16.mxu0 %v831_v2  ;;  %697 = vmatpush3.bf16.msra.mxu1 %v752_v44 }
  0xb9   :  { %698 = vmatprep.subr.bf16.mxu1 %v831_v2 }
  0xbb   :  { %679 = vmatpush3.bf16.msra.mxu0 %v745_v35 }
  0xbc   :  { %680 = vmatprep.subr.bf16.mxu0 %v831_v2  ;;  %699 = vmatpush3.bf16.msra.mxu1 %v753_v45 }
  0xbd   :  { %700 = vmatprep.subr.bf16.mxu1 %v831_v2 }
  0xbf   :  { %681 = vmatpush3.bf16.msra.mxu0 %v746_v38 }
  0xc0   :  { %701 = vmatpush3.bf16.msra.mxu1 %v754_v46 }
  0xc2   :  { %683 = vmatmul.mubr.msk.bf16.vlgmr.msra.gmra.mxu0 %vm578_vm9, %v834_v29 }
 0x161   :  { %v280_v47 = vpop.f32.mrf.mxu1 }
 0x162   :  { %v191_v48 = vpop.f32.mrf.mxu0 }
 0x163   :  { %v664_v49 = vpop.f32.mrf.mxu1  ;;  %v281_v55 = vadd.f32 %v280_v47, %v191_v48 }
 0x164   :  { %v644_v50 = vpop.f32.mrf.mxu0 }
 0x165   :  { %v283_v51 = vpop.f32.mrf.mxu1 }
 0x166   :  { %v194_v52 = vpop.f32.mrf.mxu0 }
 0x167   :  { %v665_v53 = vpop.f32.mrf.mxu1  ;;  %v284_v60 = vadd.f32 %v283_v51, %v194_v52 }
 0x168   :  { %v645_v54 = vpop.f32.mrf.mxu0 }
 0x182   :  { %v397_v56 = vpop.f32.mrf.mxu0 }
 0x183   :  { %v404_v57 = vadd.f32 %v397_v56, %v281_v55 }
 0x184   :  { %v684_v59 = vpop.f32.mrf.mxu0 }
 0x185   :  { %v413_v61 = vadd.f32 %v580_v58, %v404_v57 }
 0x186   :  { %v400_v62 = vpop.f32.mrf.mxu0 }
 0x187   :  { %v405_v63 = vadd.f32 %v400_v62, %v284_v60  ;;  %755 = vtanh.f32 %v413_v61 }
 0x188   :  { %v685_v0 = vpop.f32.mrf.mxu0 }
 0x189   :  { %v414_v1 = vadd.f32 %v580_v58, %v405_v63 }
 0x18b   :  { %757 = vtanh.f32 %v414_v1 }
 0x194   :  { %v756_v2 = vpop.eup %755 }
 0x198   :  { %v758_v3 = vpop.eup %757 }
 0x199   :  { %v417_v4 = vpack.c.bf16 %v758_v3, %v756_v2 }
 0x19b   :  { %703 = vmatmul.mubr.bf16.vlgmr.msra.gmra.mxu1 %v417_v4 }
 0x25b   :  { %v523_v6 = vpop.f32.mrf.mxu1 }
 0x25c   :  { %v524_v7 = vadd.f32 %v581_v5, %v523_v6 }
 0x25d   :  { %v704_v8 = vpop.f32.mrf.mxu1 }
 0x25e   :  { %530 = vst [vmem:[#allocation7] sm:$0xff] %v524_v7 }
 0x25f   :  { %v526_v9 = vpop.f32.mrf.mxu1 }
 0x260   :  { %v527_v10 = vadd.f32 %v581_v5, %v526_v9 }
 0x261   :  { %v705_v11 = vpop.f32.mrf.mxu1 }
 0x262   :  { %531 = vst [vmem:[#allocation7 + $0x8] sm:$0xff] %v527_v10 }
 0x263   :  { %810 = shalt.err (!%p807_p0)
}
 0x264   :  { %s836_s12 = smov 128   ;;  %s837_s4 = smov 8  }
 0x265   :  { %543 = dma.vmem_to_hbm [thread:$0]  %s538_s10, 256, %s934_s5, [#allocation4], %s836_s12, %s836_s12, %s837_s4  }
 0x266   :  { %823 = dma.done.wait [#allocation4], 256  }
 0x267   :  { %824 = vsyncadd [#allocation4], 4294967040 }
 0x268   :  { %547 = vsyncpa [#allocation3], 1 }
 0x269   :  { %548 = vsyncpa [#allocation6], 1 }
 0x26a   :  { %549 = vsyncpa [#allocation4], 1 }

</bundles_post_ra>
